<compile_context>
chip_gen: v7x
topology: tpu7x:2x2x1
jax: 0.10.0
libtpu: 0.0.40
codegen_flags: <defaults>
</compile_context>

<pallas_src>
import math

import jax
import jax.numpy as jnp
from jax.experimental import pallas as pl
from jax.experimental.pallas import tpu as pltpu

N_EMBED = 128  # matches the PyTorch script's n_embed


def _device_kind():
    try:
        return jax.devices()[0].device_kind.lower()
    except Exception:  # pragma: no cover
        return ""


def _default_tile_rows():
    """Generation-tuned row tile: large enough that per-step DMA time
    dominates the ~0.35us pipeline overhead on that chip's HBM bandwidth."""
    kind = _device_kind()
    if "v7" in kind:
        return 8192   # ~3.2 TB/s HBM -> ~4 MiB of f32 input per array per step
    if "v6" in kind:
        return 4096   # ~1.3-1.4 TB/s
    if "v5" in kind:
        return 2048   # ~0.8 TB/s
    return 4096


def _verifier_kernel(spec_ref, act_ref, ws_ref, wa_ref, b_ref, out_ref):
    """score = sigmoid([spec | act] @ W + b), concat avoided via two half-matmuls.

    spec_ref, act_ref: [TM, E]  token tiles (streamed, double-buffered; native dtype)
    ws_ref, wa_ref:    [E, 1]   bf16 weight halves (resident across the grid)
    b_ref:             [1]      f32 bias scalar (SMEM)
    out_ref:           [1, TM]  f32 verification scores, lane-dense row
    """
    # Per-tile bf16 cast for the MXU (no-op if the caller already hands bf16).
    s = spec_ref[...].astype(jnp.bfloat16)
    a = act_ref[...].astype(jnp.bfloat16)
    y = jnp.dot(s, ws_ref[...], preferred_element_type=jnp.float32)
    y = y + jnp.dot(a, wa_ref[...], preferred_element_type=jnp.float32)   # [TM, 1]
    # Relayout the logit column to a lane-major row (XLU; otherwise idle) so the
    # epilogue runs on TM/128 lane-dense vregs and the store is unmasked.
    yt = jnp.transpose(y)                                                 # [1, TM]
    yt = yt + b_ref[0]
    # Exact sigmoid: 1 / (1 + exp(-y)); memory-bound kernel, precision is free.
    out_ref[...] = pl.reciprocal(1.0 + jnp.exp(-yt))


def speculation_verifier_forward(speculated, actual, w, b, *, tm=None):
    """speculated/actual: [..., E]; w: [2E, 1]; b: [1]. Returns scores [..., 1]."""
    E = speculated.shape[-1]
    assert actual.shape == speculated.shape
    assert w.shape == (2 * E, 1)
    lead = speculated.shape[:-1]
    M = int(math.prod(lead)) if lead else 1

    # Activations stay in their native dtype (no extra HBM convert pass); only
    # the tiny weight halves / bias are prepared on the host side.
    spec2d = speculated.reshape(M, E)
    act2d = actual.reshape(M, E)
    w_s = w[:E, :].astype(jnp.bfloat16)
    w_a = w[E:, :].astype(jnp.bfloat16)
    b1 = jnp.asarray(b, jnp.float32).reshape(1)

    # Row tiling: generation-tuned TM; single full-array block when M is small
    # (a block equal to the full array is legal for any M / dtype). No host-side
    # padding -- the last grid block may be partial and its rows are discarded.
    tm = _default_tile_rows() if tm is None else int(tm)
    if M <= tm:
        TM, nblk = M, 1
    else:
        TM = tm
        nblk = (M + TM - 1) // TM
    n_out = nblk * TM

    # v7x: split the row stream across the two TensorCores when the grid allows.
    if "v7" in _device_kind() and nblk >= 2 and nblk % 2 == 0:
        dim_sem = (pltpu.CORE_PARALLEL,)
    else:
        dim_sem = ("parallel",)

    act_bytes = spec2d.dtype.itemsize

    out = pl.pallas_call(
        _verifier_kernel,
        out_shape=jax.ShapeDtypeStruct((1, n_out), jnp.float32),
        grid=(nblk,),
        in_specs=[
            pl.BlockSpec((TM, E), lambda i: (i, 0)),                    # speculated tile
            pl.BlockSpec((TM, E), lambda i: (i, 0)),                    # actual tile
            pl.BlockSpec((E, 1), lambda i: (0, 0)),                     # resident weight half
            pl.BlockSpec((E, 1), lambda i: (0, 0)),                     # resident weight half
            pl.BlockSpec(memory_space=pltpu.MemorySpace.SMEM),          # scalar bias
        ],
        out_specs=pl.BlockSpec((1, TM), lambda i: (0, i)),              # lane-dense row
        compiler_params=pltpu.CompilerParams(
            dimension_semantics=dim_sem,
            vmem_limit_bytes=32 * 1024 * 1024,
        ),
        cost_estimate=pl.CostEstimate(
            flops=4 * M * E,                 # two [TM,E]x[E,1] matmuls per token
            transcendentals=M,               # one exp per token
            bytes_accessed=2 * M * E * act_bytes + n_out * 4 + 2 * E * 2 + 4,
        ),
    )(spec2d, act2d, w_s, w_a, b1)

    return out[0, :M].reshape(lead + (1,))


def _ref_forward(speculated, actual, w, b):
    """Pure-JAX reference with the same bf16 weight rounding as the kernel, f32 math."""
    s = speculated.astype(jnp.float32)
    a = actual.astype(jnp.float32)
    combined = jnp.concatenate([s, a], axis=-1)
    w32 = w.astype(jnp.bfloat16).astype(jnp.float32)
    return jax.nn.sigmoid(combined @ w32 + b)


if __name__ == "__main__":
    key = jax.random.PRNGKey(0)
    k_s, k_a, k_w, k_b, k_s2, k_a2 = jax.random.split(key, 6)

    # Small shapes consistent with the module: batch=2, seq=8, n_embed=128.
    B, T = 2, 8
    spec = jax.random.normal(k_s, (B, T, N_EMBED), jnp.float32).astype(jnp.bfloat16)
    act = jax.random.normal(k_a, (B, T, N_EMBED), jnp.float32).astype(jnp.bfloat16)

    # nn.Linear(2*n_embed, 1) init: U(-1/sqrt(fan_in), 1/sqrt(fan_in)).
    fan_in = 2 * N_EMBED
    bound = 1.0 / math.sqrt(fan_in)
    w = jax.random.uniform(k_w, (fan_in, 1), jnp.float32, -bound, bound)
    b = jax.random.uniform(k_b, (1,), jnp.float32, -bound, bound)

    score = speculation_verifier_forward(spec, act, w, b)
    jax.block_until_ready(score)
    ref = _ref_forward(spec, act, w, b)
    assert score.shape == (B, T, 1)
    assert jnp.allclose(score, ref, atol=1e-2, rtol=1e-2), float(
        jnp.max(jnp.abs(score - ref))
    )

    # Larger token count: generation-tuned tile (single big block on all gens here).
    B2, T2 = 4, 320
    spec2 = jax.random.normal(k_s2, (B2, T2, N_EMBED), jnp.float32).astype(jnp.bfloat16)
    act2 = jax.random.normal(k_a2, (B2, T2, N_EMBED), jnp.float32).astype(jnp.bfloat16)
    score2 = speculation_verifier_forward(spec2, act2, w, b)
    jax.block_until_ready(score2)
    ref2 = _ref_forward(spec2, act2, w, b)
    assert score2.shape == (B2, T2, 1)
    assert jnp.allclose(score2, ref2, atol=1e-2, rtol=1e-2), float(
        jnp.max(jnp.abs(score2 - ref2))
    )

    # Force a multi-block grid with a partial last block (M=1280 -> 3 x 512) to
    # exercise the un-padded streaming path on every generation.
    score3 = speculation_verifier_forward(spec2, act2, w, b, tm=512)
    jax.block_until_ready(score3)
    assert score3.shape == (B2, T2, 1)
    assert jnp.allclose(score3, ref2, atol=1e-2, rtol=1e-2), float(
        jnp.max(jnp.abs(score3 - ref2))
    )

    print("KERNEL_OK")
</pallas_src>

<mosaic_0001>
module attributes {stable_mosaic.version = 11 : i64} {
  func.func @_verifier_kernel(%arg0: i32, %arg1: memref<16x128xbf16, #tpu.memory_space<vmem>>, %arg2: memref<16x128xbf16, #tpu.memory_space<vmem>>, %arg3: memref<128x1xbf16, #tpu.memory_space<vmem>>, %arg4: memref<128x1xbf16, #tpu.memory_space<vmem>>, %arg5: memref<1xf32, #tpu.memory_space<smem>>, %arg6: memref<1x16xf32, #tpu.memory_space<vmem>>) attributes {dimension_semantics = [#tpu.dimension_semantics<parallel>], iteration_bounds = array<i64: 1>, scalar_prefetch = 0 : i64, scratch_operands = 0 : i64, tpu.core_type = #tpu.core_type<tc>, window_params = [{transform_indices = @transform_0, window_bounds = array<i64: 16, 128>}, {transform_indices = @transform_1, window_bounds = array<i64: 16, 128>}, {pipeline_mode = #tpu.pipeline_mode<synchronous>, transform_indices = @transform_2, window_bounds = array<i64: 128, 1>}, {pipeline_mode = #tpu.pipeline_mode<synchronous>, transform_indices = @transform_3, window_bounds = array<i64: 128, 1>}, {transform_indices = @transform_4, window_bounds = array<i64: 1>}, {transform_indices = @transform_5, window_bounds = array<i64: 1, 16>}]} {
    %c0 = arith.constant 0 : index
    %c0_0 = arith.constant 0 : index
    %0 = vector.load %arg1[%c0, %c0_0] : memref<16x128xbf16, #tpu.memory_space<vmem>>, vector<16x128xbf16>
    %c0_1 = arith.constant 0 : index
    %c0_2 = arith.constant 0 : index
    %1 = vector.load %arg2[%c0_1, %c0_2] : memref<16x128xbf16, #tpu.memory_space<vmem>>, vector<16x128xbf16>
    %c0_3 = arith.constant 0 : index
    %c0_4 = arith.constant 0 : index
    %2 = vector.load %arg3[%c0_3, %c0_4] : memref<128x1xbf16, #tpu.memory_space<vmem>>, vector<128x1xbf16>
    %cst = arith.constant dense<0.000000e+00> : vector<16x1xf32>
    %3 = tpu.matmul %0, %2, %cst {dimension_numbers = #tpu.dot_dimension_numbers<[1], [0], [0], [1], [0, 0, 1, 1], [], []>} : vector<16x128xbf16>, vector<128x1xbf16>, vector<16x1xf32> -> vector<16x1xf32>
    %c0_5 = arith.constant 0 : index
    %c0_6 = arith.constant 0 : index
    %4 = vector.load %arg4[%c0_5, %c0_6] : memref<128x1xbf16, #tpu.memory_space<vmem>>, vector<128x1xbf16>
    %cst_7 = arith.constant dense<0.000000e+00> : vector<16x1xf32>
    %5 = tpu.matmul %1, %4, %cst_7 {dimension_numbers = #tpu.dot_dimension_numbers<[1], [0], [0], [1], [0, 0, 1, 1], [], []>} : vector<16x128xbf16>, vector<128x1xbf16>, vector<16x1xf32> -> vector<16x1xf32>
    %6 = arith.addf %3, %5 : vector<16x1xf32>
    %7 = tpu.transpose %6, [1, 0] : vector<16x1xf32> -> vector<1x16xf32>
    %c0_8 = arith.constant 0 : index
    %8 = memref.load %arg5[%c0_8] : memref<1xf32, #tpu.memory_space<smem>>
    %9 = vector.broadcast %8 : f32 to vector<1x16xf32>
    %10 = arith.addf %7, %9 : vector<1x16xf32>
    %cst_9 = arith.constant 0.000000e+00 : f32
    %11 = vector.broadcast %cst_9 : f32 to vector<1x16xf32>
    %12 = arith.subf %11, %10 : vector<1x16xf32>
    %13 = math.exp %12 : vector<1x16xf32>
    %cst_10 = arith.constant 1.000000e+00 : f32
    %14 = vector.broadcast %cst_10 : f32 to vector<1x16xf32>
    %15 = arith.addf %14, %13 : vector<1x16xf32>
    %16 = tpu.reciprocal %15 : vector<1x16xf32> -> vector<1x16xf32>
    %c0_11 = arith.constant 0 : index
    %c0_12 = arith.constant 0 : index
    %17 = vector.load %arg6[%c0_11, %c0_12] : memref<1x16xf32, #tpu.memory_space<vmem>>, vector<1x16xf32>
    tpu.vector_store %arg6[%c0_11, %c0_12], %16 {strides = array<i32>} : memref<1x16xf32, #tpu.memory_space<vmem>>, vector<1x16xf32>,
    return
  }
  func.func @transform_0(%arg0: i32) -> (i32, i32) {
    %c0_i32 = arith.constant 0 : i32
    %c0_i32_0 = arith.constant 0 : i32
    return %arg0, %c0_i32 : i32, i32
  }
  func.func @transform_1(%arg0: i32) -> (i32, i32) {
    %c0_i32 = arith.constant 0 : i32
    %c0_i32_0 = arith.constant 0 : i32
    return %arg0, %c0_i32 : i32, i32
  }
  func.func @transform_2(%arg0: i32) -> (i32, i32) {
    %c0_i32 = arith.constant 0 : i32
    %c0_i32_0 = arith.constant 0 : i32
    %c0_i32_1 = arith.constant 0 : i32
    return %c0_i32, %c0_i32_0 : i32, i32
  }
  func.func @transform_3(%arg0: i32) -> (i32, i32) {
    %c0_i32 = arith.constant 0 : i32
    %c0_i32_0 = arith.constant 0 : i32
    %c0_i32_1 = arith.constant 0 : i32
    return %c0_i32, %c0_i32_0 : i32, i32
  }
  func.func @transform_4(%arg0: i32) -> i32 {
    %c0_i32 = arith.constant 0 : i32
    %c0_i32_0 = arith.constant 0 : i32
    return %c0_i32 : i32
  }
  func.func @transform_5(%arg0: i32) -> (i32, i32) {
    %c0_i32 = arith.constant 0 : i32
    %c0_i32_0 = arith.constant 0 : i32
    return %c0_i32, %arg0 : i32, i32
  }
}

</mosaic_0001>

<bundles_post_ra>
// kernel: tpu_custom_call.1
= control target key start
LH: loop header
LB: loop body
LE: loop exit
PB: predicated region body
PF: predicated region fallthrough
CT: control target
= control target key end

     0   :  { %v432_v1 = vmov 0.0   ;;  %vm433_vm0 = vmmov 0   ;;  %s534_s0 = inlined_call_operand.vmem [shape: bf16[16,128], index: 0, kind: input, shape index: {}]   ;;  %s535_s1 = inlined_call_operand.vmem [shape: bf16[16,128], index: 1, kind: input, shape index: {}]   ;;  %s536_s2 = inlined_call_operand.vmem [shape: bf16[128,1], index: 2, kind: input, shape index: {}]   ;;  %s537_s3 = inlined_call_operand.vmem [shape: bf16[128,1], index: 3, kind: input, shape index: {}]   ;;  %s538_s4 = inlined_call_operand.<no memory space> [shape: f32[1], index: 4, kind: input, shape index: {}]   ;;  %s539_s5 = inlined_call_operand.hbm [shape: f32[1,16], index: 5, kind: output, shape index: {}]  }
   0x1   :  { %v386_v0 = vld [vmem:[%s537_s3] sm:$0xff]   ;;  %341 = vmatprep.subr.bf16.mxu1 %v432_v1  ;;  %361 = vmatprep.subr.bf16.mxu0 %v432_v1  ;;  %v388_v3 = vld [vmem:[%s537_s3 + $0x8] sm:$0xff]   ;;  %v390_v5 = vld [vmem:[%s537_s3 + $0x10] sm:$0xff]  }
   0x2   :  { %v387_v2 = vld [vmem:[%s536_s2] sm:$0xff]   ;;  %342 = vmatpush3.bf16.msra.mxu1 %v386_v0  ;;  %357 = vmatprep.mubr.msk.bf16.mxu1 %vm433_vm0, %v432_v1  ;;  %v389_v4 = vld [vmem:[%s536_s2 + $0x8] sm:$0xff]   ;;  %v391_v6 = vld [vmem:[%s536_s2 + $0x10] sm:$0xff]  }
   0x3   :  { %362 = vmatpush3.bf16.msra.mxu0 %v387_v2  ;;  %343 = vmatprep.subr.bf16.mxu1 %v432_v1  ;;  %v392_v7 = vld [vmem:[%s537_s3 + $0x18] sm:$0xff]   ;;  %v394_v9 = vld [vmem:[%s537_s3 + $0x20] sm:$0xff]   ;;  %v396_v11 = vld [vmem:[%s537_s3 + $0x28] sm:$0xff]  }
   0x4   :  { %363 = vmatprep.subr.bf16.mxu0 %v432_v1  ;;  %377 = vmatprep.mubr.msk.bf16.mxu0 %vm433_vm0, %v432_v1  ;;  %v393_v8 = vld [vmem:[%s536_s2 + $0x18] sm:$0xff]   ;;  %v395_v10 = vld [vmem:[%s536_s2 + $0x20] sm:$0xff]  }
   0x6   :  { %344 = vmatpush3.bf16.msra.mxu1 %v388_v3 }
   0x7   :  { %364 = vmatpush3.bf16.msra.mxu0 %v389_v4  ;;  %345 = vmatprep.subr.bf16.mxu1 %v432_v1 }
   0x8   :  { %365 = vmatprep.subr.bf16.mxu0 %v432_v1 }
   0xa   :  { %346 = vmatpush3.bf16.msra.mxu1 %v390_v5 }
   0xb   :  { %366 = vmatpush3.bf16.msra.mxu0 %v391_v6  ;;  %347 = vmatprep.subr.bf16.mxu1 %v432_v1 }
   0xc   :  { %367 = vmatprep.subr.bf16.mxu0 %v432_v1 }
   0xe   :  { %348 = vmatpush3.bf16.msra.mxu1 %v392_v7 }
   0xf   :  { %368 = vmatpush3.bf16.msra.mxu0 %v393_v8  ;;  %349 = vmatprep.subr.bf16.mxu1 %v432_v1 }
  0x10   :  { %369 = vmatprep.subr.bf16.mxu0 %v432_v1 }
  0x12   :  { %350 = vmatpush3.bf16.msra.mxu1 %v394_v9 }
  0x13   :  { %11 = vsyncpa [#allocation4], 0  ;;  %370 = vmatpush3.bf16.msra.mxu0 %v395_v10  ;;  %351 = vmatprep.subr.bf16.mxu1 %v432_v1  ;;  %v397_v12 = vld [vmem:[%s536_s2 + $0x28] sm:$0xff]   ;;  %v398_v13 = vld [vmem:[%s537_s3 + $0x30] sm:$0xff]   ;;  %v282_v29 = vstv %s538_s4  ;;  %vm289_vm1 = vcmask 122880  }
  0x14   :  { %371 = vmatprep.subr.bf16.mxu0 %v432_v1  ;;  %v399_v14 = vld [vmem:[%s536_s2 + $0x30] sm:$0xff]   ;;  %v400_v15 = vld [vmem:[%s537_s3 + $0x38] sm:$0xff]   ;;  %v402_v17 = vld [vmem:[%s535_s1] sm:$0xff]  }
  0x15   :  { %v401_v16 = vld [vmem:[%s536_s2 + $0x38] sm:$0xff]   ;;  %v403_v18 = vld [vmem:[%s534_s0] sm:$0xff]   ;;  %s434_s0 = smov [#allocation3]  }
  0x16   :  { %352 = vmatpush3.bf16.msra.mxu1 %v396_v11  ;;  %s297_s3 = sshll.u32 %s434_s0, 4  ;;  %s298_s3 = int_to_ptr.vmem [resolvable:$true] %s297_s3 }
  0x17   :  { %372 = vmatpush3.bf16.msra.mxu0 %v397_v12  ;;  %353 = vmatprep.subr.bf16.mxu1 %v432_v1  ;;  %s408_s29 = scalar_lea.vmem %s298_s3, 16  ;;  %s412_s30 = scalar_lea.vmem %s298_s3, 32 }
  0x18   :  { %373 = vmatprep.subr.bf16.mxu0 %v432_v1  ;;  %p409_p0 = scmp.ne.s32.totalorder %s298_s3, %s408_s29  ;;  %p413_p1 = scmp.lt.s32.totalorder %s298_s3, %s298_s3 }
  0x19   :  { %p414_p2 = scmp.lt.s32.totalorder %s412_s30, %s408_s29 }
  0x1a   :  { %354 = vmatpush3.bf16.msra.mxu1 %v398_v13 }
  0x1b   :  { %374 = vmatpush3.bf16.msra.mxu0 %v399_v14  ;;  %355 = vmatprep.subr.bf16.mxu1 %v432_v1  ;;  %p415_p3 = por %p414_p2, %p413_p1 }
  0x1c   :  { %375 = vmatprep.subr.bf16.mxu0 %v432_v1 }
  0x1d   :  { %p416_p4 = pnand %p415_p3, %p409_p0 }
  0x1e   :  { %356 = vmatpush3.bf16.msra.mxu1 %v400_v15 }
  0x1f   :  { %376 = vmatpush3.bf16.msra.mxu0 %v401_v16 }
  0x21   :  { %358 = vmatmul.mubr.bf16.vlgmr.msra.gmra.mrb[0].mxu1 %v402_v17 }
  0x22   :  { %378 = vmatmul.mubr.bf16.vlgmr.msra.gmra.mrb[0].mxu0 %v403_v18 }
  0xf4   :  { %v147_v19 = vpop.f32.mrb[0].mxu1 }
  0xf5   :  { %v242_v20 = vpop.f32.mrb[0].mxu0  ;;  %v359_v21 = vpop.f32.mrb[1].mxu1 }
  0xf6   :  { %v379_v22 = vpop.f32.mrb[1].mxu0  ;;  %v150_v23 = vpop.f32.mrb[2].mxu1  ;;  %v243_v24 = vadd.f32 %v242_v20, %v147_v19 }
  0xf7   :  { %v245_v25 = vpop.f32.mrb[2].mxu0  ;;  %v360_v26 = vpop.f32.mrb[3].mxu1 }
  0xf8   :  { %v246_v27 = vadd.f32 %v245_v25, %v150_v23  ;;  %249 = vxpose.xlu0.b32.start [1/2] (short) (narrow) %v243_v24, 8  ;;  %v380_v28 = vpop.f32.mrb[3].mxu0 }
  0xfc   :  { %250 = vxpose.xlu0.b32.end [2/2] (short) (narrow) %v246_v27, 8 }
 0x178   :  { %v265_v30 = vpop.trf.xlu0 }
 0x179   :  { %v283_v31 = vadd.f32 %v282_v29, %v265_v30 }
 0x17b   :  { %v284_v32 = vsub.f32 0.0, %v283_v31 }
 0x17d   :  { %v285_v33 = vmul.f32 1.442695, %v284_v32 }
 0x17f   :  { %404 = vpow2.f32 %v285_v33 }
 0x189   :  { %v405_v34 = vpop.eup %404 }
 0x18a   :  { %v287_v35 = vadd.f32 1.0, %v405_v34 }
 0x18c   :  { %406 = vrcp.f32 %v287_v35 }
 0x196   :  { %v407_v36 = vpop.eup %406 }
 0x197   :  { %290 = vst.msk [vmem:[#allocation3] sm:$0x1] %vm289_vm1, %v407_v36 }
 0x198   :  { %419 = shalt.err (!%p416_p4)
}
 0x199   :  { %s420_s7 = scalar_lea.hbm %s539_s5, 16 }
 0x19a   :  { %p421_p5 = scmp.ne.s32.totalorder %s539_s5, %s420_s7  ;;  %p424_p6 = scmp.lt.u32.totalorder %s420_s7, %s539_s5 }
 0x19c   :  { %p426_p7 = pnand %p424_p6, %p421_p5 }
 0x19e   :  { %429 = shalt.err (!%p426_p7)
}
 0x19f   :  { %300 = dma.vmem_to_hbm [thread:$0]  %s298_s3, 16, %s539_s5, [#allocation4]  }
 0x1a0   :  { %430 = dma.done.wait [#allocation4], 16  }
 0x1a1   :  { %431 = vsyncadd [#allocation4], 4294967280 }
 0x1a2   :  { %304 = vsyncpa [#allocation4], 1 }

</bundles_post_ra>
